<compile_context>
chip_gen: v6e
topology: v6e:2x2x1
jax: 0.10.0
libtpu: 0.0.40
codegen_flags: <defaults>
</compile_context>

<pallas_src>
import numpy as np
import jax
import jax.numpy as jnp
from jax.experimental import pallas as pl
from jax.experimental.pallas import tpu as pltpu


def make_spatial_kernel(kernel_size, theta_gamma):
    """Gaussian smoothness kernel with the center tap zeroed (matches the PyTorch module)."""
    assert theta_gamma > 0, "bandwidth of kernel must be > 0"
    assert kernel_size % 2 == 1, "kernel must be odd"
    p = (kernel_size - 1) // 2
    xs = np.linspace(-p, p, kernel_size)
    X = np.broadcast_to(xs, (kernel_size, kernel_size))
    Y = X.T
    kern = np.exp(-(X ** 2 + Y ** 2) / (2.0 * theta_gamma ** 2)).astype(np.float32)
    kern[p, p] = 0.0
    return kern


def _make_taps(kernel_size, theta_gamma):
    """(dy, dx, weight) for every non-center tap, flattened row-major."""
    kern = make_spatial_kernel(kernel_size, theta_gamma)
    p = kernel_size // 2
    taps = []
    for ky in range(kernel_size):
        for kx in range(kernel_size):
            w = float(kern[ky, kx])
            if w == 0.0:
                continue  # center excluded
            taps.append((ky - p, kx - p, w))
    return taps


def _make_inv_norm(H, W, taps):
    """Reciprocal of conv2d(ones, kernel, padding=p): purely positional, precomputed on host."""
    den = np.zeros((H, W), np.float32)
    for dy, dx, w in taps:
        oy0, oy1 = max(0, -dy), min(H, H - dy)
        ox0, ox1 = max(0, -dx), min(W, W - dx)
        den[oy0:oy1, ox0:ox1] += np.float32(w)
    return (np.float32(1.0) / den).astype(np.float32)


def spatial_filter(Q, kernel_size, theta_gamma, *, block_nc=1):
    """Pallas implementation of SpatialFilter.forward(Q)."""
    B, NC, H, W = Q.shape
    assert NC % block_nc == 0, "block_nc must divide n_classes"
    taps = _make_taps(kernel_size, theta_gamma)
    inv_norm = jnp.asarray(_make_inv_norm(H, W, taps))   # (H, W) f32
    Q = Q.astype(jnp.float32)

    def kernel(q_ref, invn_ref, out_ref):
        # q_ref/out_ref blocks: (1, block_nc, H, W); invn_ref: (H, W).
        # Accumulate the statically unrolled k^2-1 taps directly into the VMEM
        # output tile using zero-pad-equivalent index math (no padded copies,
        # no lane-alignment-destroying shifts of the source arrays).
        out_ref[...] = jnp.zeros_like(out_ref)
        for dy, dx, w in taps:
            oy0, oy1 = max(0, -dy), min(H, H - dy)   # valid output rows for this tap
            ox0, ox1 = max(0, -dx), min(W, W - dx)   # valid output cols for this tap
            out_ref[0, :, oy0:oy1, ox0:ox1] += w * q_ref[
                0, :, oy0 + dy:oy1 + dy, ox0 + dx:ox1 + dx]
        # Normalization: one broadcast multiply by the precomputed reciprocal
        # of the ones-convolution (divide-free epilogue).
        out_ref[...] = out_ref[...] * invn_ref[...][None, None, :, :]

    # TODO(synk): for very large images (H*W tiles that no longer fit VMEM), add an
    # H-tiling grid axis with a +/-(kernel_size//2) row halo per tile.
    grid = (B, NC // block_nc)
    return pl.pallas_call(
        kernel,
        out_shape=jax.ShapeDtypeStruct((B, NC, H, W), jnp.float32),
        grid=grid,
        in_specs=[
            pl.BlockSpec((1, block_nc, H, W), lambda b, c: (b, c, 0, 0)),
            pl.BlockSpec((H, W), lambda b, c: (0, 0)),
        ],
        out_specs=pl.BlockSpec((1, block_nc, H, W), lambda b, c: (b, c, 0, 0)),
        compiler_params=pltpu.CompilerParams(
            dimension_semantics=("parallel", "parallel")),
    )(Q, inv_norm)


def spatial_filter_ref(Q, kernel_size, theta_gamma):
    """Pure-JAX reference reproducing the PyTorch forward (conv-as-shifts + divide)."""
    B, NC, H, W = Q.shape
    p = kernel_size // 2
    taps = _make_taps(kernel_size, theta_gamma)
    Qf = Q.astype(jnp.float32)
    Qpad = jnp.pad(Qf, ((0, 0), (0, 0), (p, p), (p, p)))
    ones_pad = jnp.pad(jnp.ones_like(Qf), ((0, 0), (0, 0), (p, p), (p, p)))
    num = jnp.zeros_like(Qf)
    den = jnp.zeros_like(Qf)
    for dy, dx, w in taps:
        ky, kx = dy + p, dx + p
        num = num + w * Qpad[:, :, ky:ky + H, kx:kx + W]
        den = den + w * ones_pad[:, :, ky:ky + H, kx:kx + W]
    return num / den


if __name__ == "__main__":
    # Small deterministic example consistent with the module's forward.
    B, N_CLASSES, H, W = 2, 4, 16, 16
    KERNEL_SIZE, THETA_GAMMA = 3, 2.0

    key = jax.random.PRNGKey(0)
    Q = jax.nn.softmax(
        jax.random.normal(key, (B, N_CLASSES, H, W), dtype=jnp.float32), axis=1)

    out = spatial_filter(Q, KERNEL_SIZE, THETA_GAMMA)
    out = jax.block_until_ready(out)

    ref = spatial_filter_ref(Q, KERNEL_SIZE, THETA_GAMMA)
    assert out.shape == (B, N_CLASSES, H, W)
    assert jnp.allclose(out, ref, atol=1e-5, rtol=1e-5)

    print("KERNEL_OK")
</pallas_src>

<mosaic_0001>
module attributes {stable_mosaic.version = 11 : i64} {
  func.func @kernel(%arg0: i32, %arg1: i32, %arg2: memref<1x1x16x16xf32, #tpu.memory_space<vmem>>, %arg3: memref<16x16xf32, #tpu.memory_space<vmem>>, %arg4: memref<1x1x16x16xf32, #tpu.memory_space<vmem>>) attributes {dimension_semantics = [#tpu.dimension_semantics<parallel>, #tpu.dimension_semantics<parallel>], iteration_bounds = array<i64: 2, 4>, scalar_prefetch = 0 : i64, scratch_operands = 0 : i64, tpu.core_type = #tpu.core_type<tc>, window_params = [{transform_indices = @transform_0, window_bounds = array<i64: 1, 1, 16, 16>}, {pipeline_mode = #tpu.pipeline_mode<synchronous>, transform_indices = @transform_1, window_bounds = array<i64: 16, 16>}, {transform_indices = @transform_2, window_bounds = array<i64: 1, 1, 16, 16>}]} {
    %cst = arith.constant 0.000000e+00 : f32
    %0 = vector.broadcast %cst : f32 to vector<1x1x16x16xf32>
    %c0 = arith.constant 0 : index
    %c0_0 = arith.constant 0 : index
    %c0_1 = arith.constant 0 : index
    %c0_2 = arith.constant 0 : index
    %1 = vector.load %arg4[%c0, %c0_0, %c0_1, %c0_2] : memref<1x1x16x16xf32, #tpu.memory_space<vmem>>, vector<1x1x16x16xf32>
    tpu.vector_store %arg4[%c0, %c0_0, %c0_1, %c0_2], %0 {strides = array<i32>} : memref<1x1x16x16xf32, #tpu.memory_space<vmem>>, vector<1x1x16x16xf32>,
    %c0_3 = arith.constant 0 : index
    %c0_4 = arith.constant 0 : index
    %c1 = arith.constant 1 : index
    %c1_5 = arith.constant 1 : index
    %2 = vector.load %arg4[%c0_3, %c0_4, %c1, %c1_5] : memref<1x1x16x16xf32, #tpu.memory_space<vmem>>, vector<1x1x15x15xf32>
    %3 = vector.shape_cast %2 : vector<1x1x15x15xf32> to vector<1x15x15xf32>
    %c0_6 = arith.constant 0 : index
    %c0_7 = arith.constant 0 : index
    %c0_8 = arith.constant 0 : index
    %c0_9 = arith.constant 0 : index
    %4 = vector.load %arg2[%c0_6, %c0_7, %c0_8, %c0_9] : memref<1x1x16x16xf32, #tpu.memory_space<vmem>>, vector<1x1x15x15xf32>
    %5 = vector.shape_cast %4 : vector<1x1x15x15xf32> to vector<1x15x15xf32>
    %cst_10 = arith.constant 0.778800785 : f32
    %6 = vector.broadcast %cst_10 : f32 to vector<1x15x15xf32>
    %7 = arith.mulf %6, %5 : vector<1x15x15xf32>
    %8 = arith.addf %3, %7 : vector<1x15x15xf32>
    %c0_11 = arith.constant 0 : index
    %c0_12 = arith.constant 0 : index
    %c1_13 = arith.constant 1 : index
    %c1_14 = arith.constant 1 : index
    %9 = vector.load %arg4[%c0_11, %c0_12, %c1_13, %c1_14] : memref<1x1x16x16xf32, #tpu.memory_space<vmem>>, vector<1x1x15x15xf32>
    %10 = vector.shape_cast %9 : vector<1x1x15x15xf32> to vector<1x15x15xf32>
    %11 = vector.shape_cast %8 : vector<1x15x15xf32> to vector<1x1x15x15xf32>
    tpu.vector_store %arg4[%c0_11, %c0_12, %c1_13, %c1_14], %11 {strides = array<i32>} : memref<1x1x16x16xf32, #tpu.memory_space<vmem>>, vector<1x1x15x15xf32>,
    %c0_15 = arith.constant 0 : index
    %c0_16 = arith.constant 0 : index
    %c1_17 = arith.constant 1 : index
    %c0_18 = arith.constant 0 : index
    %12 = vector.load %arg4[%c0_15, %c0_16, %c1_17, %c0_18] : memref<1x1x16x16xf32, #tpu.memory_space<vmem>>, vector<1x1x15x16xf32>
    %13 = vector.shape_cast %12 : vector<1x1x15x16xf32> to vector<1x15x16xf32>
    %c0_19 = arith.constant 0 : index
    %c0_20 = arith.constant 0 : index
    %c0_21 = arith.constant 0 : index
    %c0_22 = arith.constant 0 : index
    %14 = vector.load %arg2[%c0_19, %c0_20, %c0_21, %c0_22] : memref<1x1x16x16xf32, #tpu.memory_space<vmem>>, vector<1x1x15x16xf32>
    %15 = vector.shape_cast %14 : vector<1x1x15x16xf32> to vector<1x15x16xf32>
    %cst_23 = arith.constant 0.882496893 : f32
    %16 = vector.broadcast %cst_23 : f32 to vector<1x15x16xf32>
    %17 = arith.mulf %16, %15 : vector<1x15x16xf32>
    %18 = arith.addf %13, %17 : vector<1x15x16xf32>
    %c0_24 = arith.constant 0 : index
    %c0_25 = arith.constant 0 : index
    %c1_26 = arith.constant 1 : index
    %c0_27 = arith.constant 0 : index
    %19 = vector.load %arg4[%c0_24, %c0_25, %c1_26, %c0_27] : memref<1x1x16x16xf32, #tpu.memory_space<vmem>>, vector<1x1x15x16xf32>
    %20 = vector.shape_cast %19 : vector<1x1x15x16xf32> to vector<1x15x16xf32>
    %21 = vector.shape_cast %18 : vector<1x15x16xf32> to vector<1x1x15x16xf32>
    tpu.vector_store %arg4[%c0_24, %c0_25, %c1_26, %c0_27], %21 {strides = array<i32>} : memref<1x1x16x16xf32, #tpu.memory_space<vmem>>, vector<1x1x15x16xf32>,
    %c0_28 = arith.constant 0 : index
    %c0_29 = arith.constant 0 : index
    %c1_30 = arith.constant 1 : index
    %c0_31 = arith.constant 0 : index
    %22 = vector.load %arg4[%c0_28, %c0_29, %c1_30, %c0_31] : memref<1x1x16x16xf32, #tpu.memory_space<vmem>>, vector<1x1x15x15xf32>
    %23 = vector.shape_cast %22 : vector<1x1x15x15xf32> to vector<1x15x15xf32>
    %c0_32 = arith.constant 0 : index
    %c0_33 = arith.constant 0 : index
    %c0_34 = arith.constant 0 : index
    %c1_35 = arith.constant 1 : index
    %24 = vector.load %arg2[%c0_32, %c0_33, %c0_34, %c1_35] : memref<1x1x16x16xf32, #tpu.memory_space<vmem>>, vector<1x1x15x15xf32>
    %25 = vector.shape_cast %24 : vector<1x1x15x15xf32> to vector<1x15x15xf32>
    %cst_36 = arith.constant 0.778800785 : f32
    %26 = vector.broadcast %cst_36 : f32 to vector<1x15x15xf32>
    %27 = arith.mulf %26, %25 : vector<1x15x15xf32>
    %28 = arith.addf %23, %27 : vector<1x15x15xf32>
    %c0_37 = arith.constant 0 : index
    %c0_38 = arith.constant 0 : index
    %c1_39 = arith.constant 1 : index
    %c0_40 = arith.constant 0 : index
    %29 = vector.load %arg4[%c0_37, %c0_38, %c1_39, %c0_40] : memref<1x1x16x16xf32, #tpu.memory_space<vmem>>, vector<1x1x15x15xf32>
    %30 = vector.shape_cast %29 : vector<1x1x15x15xf32> to vector<1x15x15xf32>
    %31 = vector.shape_cast %28 : vector<1x15x15xf32> to vector<1x1x15x15xf32>
    tpu.vector_store %arg4[%c0_37, %c0_38, %c1_39, %c0_40], %31 {strides = array<i32>} : memref<1x1x16x16xf32, #tpu.memory_space<vmem>>, vector<1x1x15x15xf32>,
    %c0_41 = arith.constant 0 : index
    %c0_42 = arith.constant 0 : index
    %c0_43 = arith.constant 0 : index
    %c1_44 = arith.constant 1 : index
    %32 = vector.load %arg4[%c0_41, %c0_42, %c0_43, %c1_44] : memref<1x1x16x16xf32, #tpu.memory_space<vmem>>, vector<1x1x16x15xf32>
    %33 = vector.shape_cast %32 : vector<1x1x16x15xf32> to vector<1x16x15xf32>
    %c0_45 = arith.constant 0 : index
    %c0_46 = arith.constant 0 : index
    %c0_47 = arith.constant 0 : index
    %c0_48 = arith.constant 0 : index
    %34 = vector.load %arg2[%c0_45, %c0_46, %c0_47, %c0_48] : memref<1x1x16x16xf32, #tpu.memory_space<vmem>>, vector<1x1x16x15xf32>
    %35 = vector.shape_cast %34 : vector<1x1x16x15xf32> to vector<1x16x15xf32>
    %cst_49 = arith.constant 0.882496893 : f32
    %36 = vector.broadcast %cst_49 : f32 to vector<1x16x15xf32>
    %37 = arith.mulf %36, %35 : vector<1x16x15xf32>
    %38 = arith.addf %33, %37 : vector<1x16x15xf32>
    %c0_50 = arith.constant 0 : index
    %c0_51 = arith.constant 0 : index
    %c0_52 = arith.constant 0 : index
    %c1_53 = arith.constant 1 : index
    %39 = vector.load %arg4[%c0_50, %c0_51, %c0_52, %c1_53] : memref<1x1x16x16xf32, #tpu.memory_space<vmem>>, vector<1x1x16x15xf32>
    %40 = vector.shape_cast %39 : vector<1x1x16x15xf32> to vector<1x16x15xf32>
    %41 = vector.shape_cast %38 : vector<1x16x15xf32> to vector<1x1x16x15xf32>
    tpu.vector_store %arg4[%c0_50, %c0_51, %c0_52, %c1_53], %41 {strides = array<i32>} : memref<1x1x16x16xf32, #tpu.memory_space<vmem>>, vector<1x1x16x15xf32>,
    %c0_54 = arith.constant 0 : index
    %c0_55 = arith.constant 0 : index
    %c0_56 = arith.constant 0 : index
    %c0_57 = arith.constant 0 : index
    %42 = vector.load %arg4[%c0_54, %c0_55, %c0_56, %c0_57] : memref<1x1x16x16xf32, #tpu.memory_space<vmem>>, vector<1x1x16x15xf32>
    %43 = vector.shape_cast %42 : vector<1x1x16x15xf32> to vector<1x16x15xf32>
    %c0_58 = arith.constant 0 : index
    %c0_59 = arith.constant 0 : index
    %c0_60 = arith.constant 0 : index
    %c1_61 = arith.constant 1 : index
    %44 = vector.load %arg2[%c0_58, %c0_59, %c0_60, %c1_61] : memref<1x1x16x16xf32, #tpu.memory_space<vmem>>, vector<1x1x16x15xf32>
    %45 = vector.shape_cast %44 : vector<1x1x16x15xf32> to vector<1x16x15xf32>
    %cst_62 = arith.constant 0.882496893 : f32
    %46 = vector.broadcast %cst_62 : f32 to vector<1x16x15xf32>
    %47 = arith.mulf %46, %45 : vector<1x16x15xf32>
    %48 = arith.addf %43, %47 : vector<1x16x15xf32>
    %c0_63 = arith.constant 0 : index
    %c0_64 = arith.constant 0 : index
    %c0_65 = arith.constant 0 : index
    %c0_66 = arith.constant 0 : index
    %49 = vector.load %arg4[%c0_63, %c0_64, %c0_65, %c0_66] : memref<1x1x16x16xf32, #tpu.memory_space<vmem>>, vector<1x1x16x15xf32>
    %50 = vector.shape_cast %49 : vector<1x1x16x15xf32> to vector<1x16x15xf32>
    %51 = vector.shape_cast %48 : vector<1x16x15xf32> to vector<1x1x16x15xf32>
    tpu.vector_store %arg4[%c0_63, %c0_64, %c0_65, %c0_66], %51 {strides = array<i32>} : memref<1x1x16x16xf32, #tpu.memory_space<vmem>>, vector<1x1x16x15xf32>,
    %c0_67 = arith.constant 0 : index
    %c0_68 = arith.constant 0 : index
    %c0_69 = arith.constant 0 : index
    %c1_70 = arith.constant 1 : index
    %52 = vector.load %arg4[%c0_67, %c0_68, %c0_69, %c1_70] : memref<1x1x16x16xf32, #tpu.memory_space<vmem>>, vector<1x1x15x15xf32>
    %53 = vector.shape_cast %52 : vector<1x1x15x15xf32> to vector<1x15x15xf32>
    %c0_71 = arith.constant 0 : index
    %c0_72 = arith.constant 0 : index
    %c1_73 = arith.constant 1 : index
    %c0_74 = arith.constant 0 : index
    %54 = vector.load %arg2[%c0_71, %c0_72, %c1_73, %c0_74] : memref<1x1x16x16xf32, #tpu.memory_space<vmem>>, vector<1x1x15x15xf32>
    %55 = vector.shape_cast %54 : vector<1x1x15x15xf32> to vector<1x15x15xf32>
    %cst_75 = arith.constant 0.778800785 : f32
    %56 = vector.broadcast %cst_75 : f32 to vector<1x15x15xf32>
    %57 = arith.mulf %56, %55 : vector<1x15x15xf32>
    %58 = arith.addf %53, %57 : vector<1x15x15xf32>
    %c0_76 = arith.constant 0 : index
    %c0_77 = arith.constant 0 : index
    %c0_78 = arith.constant 0 : index
    %c1_79 = arith.constant 1 : index
    %59 = vector.load %arg4[%c0_76, %c0_77, %c0_78, %c1_79] : memref<1x1x16x16xf32, #tpu.memory_space<vmem>>, vector<1x1x15x15xf32>
    %60 = vector.shape_cast %59 : vector<1x1x15x15xf32> to vector<1x15x15xf32>
    %61 = vector.shape_cast %58 : vector<1x15x15xf32> to vector<1x1x15x15xf32>
    tpu.vector_store %arg4[%c0_76, %c0_77, %c0_78, %c1_79], %61 {strides = array<i32>} : memref<1x1x16x16xf32, #tpu.memory_space<vmem>>, vector<1x1x15x15xf32>,
    %c0_80 = arith.constant 0 : index
    %c0_81 = arith.constant 0 : index
    %c0_82 = arith.constant 0 : index
    %c0_83 = arith.constant 0 : index
    %62 = vector.load %arg4[%c0_80, %c0_81, %c0_82, %c0_83] : memref<1x1x16x16xf32, #tpu.memory_space<vmem>>, vector<1x1x15x16xf32>
    %63 = vector.shape_cast %62 : vector<1x1x15x16xf32> to vector<1x15x16xf32>
    %c0_84 = arith.constant 0 : index
    %c0_85 = arith.constant 0 : index
    %c1_86 = arith.constant 1 : index
    %c0_87 = arith.constant 0 : index
    %64 = vector.load %arg2[%c0_84, %c0_85, %c1_86, %c0_87] : memref<1x1x16x16xf32, #tpu.memory_space<vmem>>, vector<1x1x15x16xf32>
    %65 = vector.shape_cast %64 : vector<1x1x15x16xf32> to vector<1x15x16xf32>
    %cst_88 = arith.constant 0.882496893 : f32
    %66 = vector.broadcast %cst_88 : f32 to vector<1x15x16xf32>
    %67 = arith.mulf %66, %65 : vector<1x15x16xf32>
    %68 = arith.addf %63, %67 : vector<1x15x16xf32>
    %c0_89 = arith.constant 0 : index
    %c0_90 = arith.constant 0 : index
    %c0_91 = arith.constant 0 : index
    %c0_92 = arith.constant 0 : index
    %69 = vector.load %arg4[%c0_89, %c0_90, %c0_91, %c0_92] : memref<1x1x16x16xf32, #tpu.memory_space<vmem>>, vector<1x1x15x16xf32>
    %70 = vector.shape_cast %69 : vector<1x1x15x16xf32> to vector<1x15x16xf32>
    %71 = vector.shape_cast %68 : vector<1x15x16xf32> to vector<1x1x15x16xf32>
    tpu.vector_store %arg4[%c0_89, %c0_90, %c0_91, %c0_92], %71 {strides = array<i32>} : memref<1x1x16x16xf32, #tpu.memory_space<vmem>>, vector<1x1x15x16xf32>,
    %c0_93 = arith.constant 0 : index
    %c0_94 = arith.constant 0 : index
    %c0_95 = arith.constant 0 : index
    %c0_96 = arith.constant 0 : index
    %72 = vector.load %arg4[%c0_93, %c0_94, %c0_95, %c0_96] : memref<1x1x16x16xf32, #tpu.memory_space<vmem>>, vector<1x1x15x15xf32>
    %73 = vector.shape_cast %72 : vector<1x1x15x15xf32> to vector<1x15x15xf32>
    %c0_97 = arith.constant 0 : index
    %c0_98 = arith.constant 0 : index
    %c1_99 = arith.constant 1 : index
    %c1_100 = arith.constant 1 : index
    %74 = vector.load %arg2[%c0_97, %c0_98, %c1_99, %c1_100] : memref<1x1x16x16xf32, #tpu.memory_space<vmem>>, vector<1x1x15x15xf32>
    %75 = vector.shape_cast %74 : vector<1x1x15x15xf32> to vector<1x15x15xf32>
    %cst_101 = arith.constant 0.778800785 : f32
    %76 = vector.broadcast %cst_101 : f32 to vector<1x15x15xf32>
    %77 = arith.mulf %76, %75 : vector<1x15x15xf32>
    %78 = arith.addf %73, %77 : vector<1x15x15xf32>
    %c0_102 = arith.constant 0 : index
    %c0_103 = arith.constant 0 : index
    %c0_104 = arith.constant 0 : index
    %c0_105 = arith.constant 0 : index
    %79 = vector.load %arg4[%c0_102, %c0_103, %c0_104, %c0_105] : memref<1x1x16x16xf32, #tpu.memory_space<vmem>>, vector<1x1x15x15xf32>
    %80 = vector.shape_cast %79 : vector<1x1x15x15xf32> to vector<1x15x15xf32>
    %81 = vector.shape_cast %78 : vector<1x15x15xf32> to vector<1x1x15x15xf32>
    tpu.vector_store %arg4[%c0_102, %c0_103, %c0_104, %c0_105], %81 {strides = array<i32>} : memref<1x1x16x16xf32, #tpu.memory_space<vmem>>, vector<1x1x15x15xf32>,
    %c0_106 = arith.constant 0 : index
    %c0_107 = arith.constant 0 : index
    %c0_108 = arith.constant 0 : index
    %c0_109 = arith.constant 0 : index
    %82 = vector.load %arg4[%c0_106, %c0_107, %c0_108, %c0_109] : memref<1x1x16x16xf32, #tpu.memory_space<vmem>>, vector<1x1x16x16xf32>
    %c0_110 = arith.constant 0 : index
    %c0_111 = arith.constant 0 : index
    %83 = vector.load %arg3[%c0_110, %c0_111] : memref<16x16xf32, #tpu.memory_space<vmem>>, vector<16x16xf32>
    %84 = vector.shape_cast %83 : vector<16x16xf32> to vector<1x1x16x16xf32>
    %85 = arith.mulf %82, %84 : vector<1x1x16x16xf32>
    %c0_112 = arith.constant 0 : index
    %c0_113 = arith.constant 0 : index
    %c0_114 = arith.constant 0 : index
    %c0_115 = arith.constant 0 : index
    %86 = vector.load %arg4[%c0_112, %c0_113, %c0_114, %c0_115] : memref<1x1x16x16xf32, #tpu.memory_space<vmem>>, vector<1x1x16x16xf32>
    tpu.vector_store %arg4[%c0_112, %c0_113, %c0_114, %c0_115], %85 {strides = array<i32>} : memref<1x1x16x16xf32, #tpu.memory_space<vmem>>, vector<1x1x16x16xf32>,
    return
  }
  func.func @transform_0(%arg0: i32, %arg1: i32) -> (i32, i32, i32, i32) {
    %c0_i32 = arith.constant 0 : i32
    %c0_i32_0 = arith.constant 0 : i32
    %c0_i32_1 = arith.constant 0 : i32
    return %arg0, %arg1, %c0_i32, %c0_i32_0 : i32, i32, i32, i32
  }
  func.func @transform_1(%arg0: i32, %arg1: i32) -> (i32, i32) {
    %c0_i32 = arith.constant 0 : i32
    %c0_i32_0 = arith.constant 0 : i32
    %c0_i32_1 = arith.constant 0 : i32
    return %c0_i32, %c0_i32_0 : i32, i32
  }
  func.func @transform_2(%arg0: i32, %arg1: i32) -> (i32, i32, i32, i32) {
    %c0_i32 = arith.constant 0 : i32
    %c0_i32_0 = arith.constant 0 : i32
    %c0_i32_1 = arith.constant 0 : i32
    return %arg0, %arg1, %c0_i32, %c0_i32_0 : i32, i32, i32, i32
  }
}

</mosaic_0001>

<bundles_post_ra>
// kernel: tpu_custom_call.1
= control target key start
LH: loop header
LB: loop body
LE: loop exit
PB: predicated region body
PF: predicated region fallthrough
CT: control target
= control target key end

     0   :  { %s1030_s0 = inlined_call_operand.hbm [shape: f32[2,4,16,16], index: 0, kind: input, shape index: {}]   ;;  %s1031_s1 = inlined_call_operand.hbm [shape: f32[16,16], index: 1, kind: input, shape index: {}]   ;;  %s1032_s2 = inlined_call_operand.hbm [shape: f32[2,4,16,16], index: 2, kind: output, shape index: {}]  }
   0x1   :  { %1039 = sst [smem:[#allocation14_spill]] %s1031_s1 }
   0x2   :  { %7 = vsyncpa [#allocation3], 0 }
   0x3   :  { %9 = vsyncpa [#allocation3 + $0x1], 0 }
   0x4   :  { %10 = vsyncpa [#allocation6], 0 }
   0x5   :  { %11 = vsyncpa [#allocation4], 0 }
   0x6   :  { %13 = vsyncpa [#allocation4 + $0x1], 0  ;;  %s751_s9 = smov 0   ;;  %s753_s10 = smov 0  }
   0x7   :  { %s755_s11 = smov 0   ;;  %s757_s12 = smov 0  }
   0x8   :  { %s759_s13 = smov 0   ;;  %s761_s14 = smov 0  }
   0x9   :  { %s763_s15 = smov 0   ;;  %s765_s16 = smov 0  }
   0xa LB: > { %1040 = sst [smem:[#allocation11_spill]] %s716_s14  ;;  %s455_s17 = sadd.s32 4294967295, %s724_s16   ;;  %s724_s16 = sphi %s765_s16, %s19_s16   ;;  %s720_s15 = sphi %s763_s15, %s1063_s15   ;;  %s716_s14 = sphi %s761_s14, %s1058_s14   ;;  %s712_s13 = sphi %s759_s13, %s1062_s13   ;;  %s708_s12 = sphi %s757_s12, %s1057_s12   ;;  %s704_s11 = sphi %s755_s11, %s1061_s11   ;;  %s700_s10 = sphi %s753_s10, %s1060_s10   ;;  %s696_s9 = sphi %s751_s9, %s1059_s9  }
   0xb   : > { %s456_s18 = sadd.s32 4294967294, %s724_s16   ;;  %p53_p0 = scmp.ne.s32.totalorder %s700_s10, %s696_s9 }
   0xc   : > { %p795_p1 = scmp.eq.s32.totalorder %s455_s17, 0  ;;  %p799_p2 = scmp.eq.s32.totalorder %s455_s17, 7 }
   0xd   : > { %p106_p3 = scmp.eq.s32.totalorder %s456_s18, 7  ;;  %p457_p5 = scmp.ge.s32.totalorder %s724_s16, 1 }
   0xe   : > { %p805_p4 = por %p795_p1, %p53_p0  ;;  %p113_p7 = scmp.lt.s32.totalorder %s724_s16, 9 }
   0xf   : > { %p810_p6 = por %p106_p3, %p53_p0  ;;  %s726_s24 = smov [#allocation5]  }
  0x10   : > { %s1043_s21 = scalar_select %p805_p4, 1, 0 }
  0x11   : > { %s1044_s22 = scalar_select %p810_p6, 1, 0 }
  0x12   : > { %p815_p8 = pnand %p457_p5, %p113_p7  ;;  %s125_s25 = sshll.u32 %s726_s24, 4  ;;  %s126_s25 = int_to_ptr.vmem [resolvable:$true] %s125_s25 }
  0x13   : > { %1045 = sst [smem:[#allocation12_spill]] %s1044_s22  ;;  %s581_s26 = scalar_lea.vmem %s126_s25, 256 }
  0x14   : > { %p482_p9 = pneg %p815_p8  ;;  %p582_p12 = scmp.ne.s32.totalorder %s126_s25, %s581_s26 }
  0x15   : > { %p589_p3 = scmp.lt.s32.totalorder %s126_s25, %s126_s25  ;;  %p590_p6 = scmp.lt.s32.totalorder %s581_s26, %s581_s26 }
  0x16   : > { %p483_p10 = pnand %p482_p9, %p795_p1 }
  0x17   : > { %p591_p4 = por %p590_p6, %p589_p3 }
  0x18   : > { %p572_p11 = pneg %p483_p10 }
  0x1a   : > { %p584_p13 = pnand %p582_p12, %p572_p11 }
  0x1c   : > { %p585_p0 = pneg %p584_p13 }
  0x1e   : > { %p592_p5 = pnand %p591_p4, %p585_p0 }
  0x20   : > { %595 = shalt.err (!%p592_p5)
}
  0x21   : > { %s1034_s27 = smov 128   ;;  %s1035_s28 = smov 8  }
  0x22   : > { %s1047_s1 = sld [smem:[#allocation14_spill]]  ;;  %s28_s3 = sadd.s32 1, %s716_s14 }
  0x23   : > { %p29_p4 = scmp.ge.s32.totalorder %s28_s3, 4  ;;  %s31_s4 = sadd.s32 1, %s720_s15 }
  0x24   : > { %s40_s5 = sadd.s32 1, %s704_s11  ;;  %p47_p6 = scmp.ne.s32.totalorder %s704_s11, %s700_s10 }
  0x25   : > { %s1065_s3 = smov (%p29_p4, %s28_s3), 0  ;;  %s1067_s4 = smov (!%p29_p4, %s31_s4), %s720_s15 }
  0x26   : > { %1048 = sst [smem:[#allocation13_spill]] %s1065_s3  ;;  %s36_s6 = ssub.s32 %s716_s14, %s1065_s3 }
  0x27   : > { %p48_p7 = scmp.eq.s32.totalorder %s724_s16, 0  ;;  %p33_p9 = scmp.ge.s32.totalorder %s1067_s4, 2 }
  0x28   : > { %485 = dma.hbm_to_vmem [thread:$0]  (!%p483_p10), %s1047_s1, 256, %s126_s25, [#allocation6], %s1034_s27, %s1034_s27, %s1035_s28  }
  0x29   : > { %p842_p11 = por %p799_p2, %p47_p6  ;;  %p846_p10 = por %p48_p7, %p47_p6 }
  0x2a   : > { %p495_p12 = scmp.lt.s32.totalorder %s724_s16, 8  ;;  %s1069_s4 = smov (%p33_p9, %s1067_s4), 0 }
  0x2b   : > { %s139_s17 = sand.u32 1, %s704_s11   ;;  %s461_s18 = sshll.u32 %s716_s14, 1 }
  0x2c   : > { %s35_s24 = ssub.s32 %s720_s15, %s1069_s4  ;;  %s460_s26 = sshll.u32 %s139_s17, 4 }
  0x2d   : > { %s37_s25 = sor.u32 %s36_s6, %s35_s24  ;;  %s462_s20 = sshll.u32 %s720_s15, 3 }
  0x2e   : > { %p38_p13 = scmp.eq.s32.totalorder %s37_s25, 0  ;;  %s143_s29 = scalar_lea.vmem [#allocation2], %s460_s26 }
  0x2f   : > { %s152_s30 = sshll.u32 %s143_s29, 4  ;;  %s149_s28 = sadd.s32 %s462_s20, %s461_s18  ;;  %s153_s30 = int_to_ptr.vmem [resolvable:$true] %s152_s30 }
  0x30   : > { %s859_s27 = scalar_select %p38_p13, %s704_s11, %s40_s5  }
  0x31   : > { %s463_s1 = sshll.u32 %s149_s28, 7  ;;  %p865_p2 = pnand %p495_p12, %p846_p10 }
  0x32   : > { %s151_s6 = scalar_lea.hbm %s1030_s0, %s463_s1  ;;  %s140_s24 = scalar_lea.sflag [#allocation3], %s139_s17 }
  0x33   : > { %p598_p0 = pneg %p865_p2  ;;  %s609_s25 = scalar_lea.vmem %s153_s30, 256 }
  0x34   : > { %p610_p3 = scmp.ne.s32.totalorder %s153_s30, %s609_s25  ;;  %s729_s5 = smov [#allocation2]  }
  0x35   : > { %s614_s28 = sshll.u32 %s729_s5, 4  ;;  %s615_s28 = int_to_ptr.vmem [resolvable:$false] %s614_s28 }
  0x36   : > { %p612_p5 = pnand %p610_p3, %p598_p0  ;;  %s616_s8 = scalar_lea.vmem %s615_s28, 512 }
  0x37   : > { %p617_p6 = scmp.lt.s32.totalorder %s153_s30, %s615_s28  ;;  %p618_p7 = scmp.lt.s32.totalorder %s616_s8, %s609_s25 }
  0x38   : > { %p613_p4 = pneg %p612_p5 }
  0x39   : > { %p619_p9 = por %p618_p7, %p617_p6 }
  0x3b   : > { %p620_p10 = pnand %p619_p9, %p613_p4 }
  0x3d   : > { %623 = shalt.err (!%p620_p10)
}
  0x3e   : > { %s1052_s14 = smov 8   ;;  %s1053_s1 = smov 128  }
  0x3f   : > { %489 = dma.hbm_to_vmem [thread:$0]  (!%p865_p2), %s151_s6, 256, %s153_s30, %s140_s24, %s1053_s1, %s1053_s1, %s1052_s14  }
  0x40   : > { %164 = sbr.rel (%p815_p8) target bundleno = 290 (0x122), region = 28  ;;  %s882_s22 = sand.u32 (!%p815_p8), 1, %s700_s10  }
  0x41   : > { %s465_s17 = sshll.u32 (!%p815_p8), %s882_s22, 4  ;;  %s167_s18 = scalar_lea.sflag (!%p815_p8), [#allocation3], %s882_s22 }
  0x42   : > { %s886_s26 = scalar_lea.vmem (!%p815_p8), [#allocation2], %s465_s17  ;;  %p1054_p12 = scmp.ne.s32.totalorder (!%p815_p8), %s1043_s21, 0 }
  0x45   : > { %683 = dma.done.wait (%p1054_p12), %s167_s18, 256  }
  0x46   : > { %685 = vsyncadd (%p1054_p12), %s167_s18, 4294967040 }
  0x47   : > { %687 = dma.done.wait (%p795_p1), [#allocation6], 256  }
  0x48   : > { %689 = vsyncadd (%p795_p1), [#allocation6], 4294967040  ;;  %vm195_vm0 = vcmask 130048   ;;  %s896_s23 = scalar_lea.vmem [#allocation7], %s465_s17  ;;  %v730_v0 = vmov 0.0   ;;  %v200_v1 = vld [vmem:[%s886_s26] sm:$0xff] }
  0x49   : > { %196 = vst.msk [vmem:[%s896_s23] sm:$0xff] %vm195_vm0, %v730_v0  ;;  %197 = vst.msk [vmem:[%s896_s23 + $0x8] sm:$0xff] %vm195_vm0, %v730_v0  ;;  %v201_v2 = vld [vmem:[%s886_s26 + $0x8] sm:$0x7f]  ;;  %v202_v4 = vmul.f32 0.7788008, %v200_v1 }
  0x4a   : > { %v232_v3 = vld [vmem:[%s886_s26 + $0x8] sm:$0x7f]  ;;  %s731_s19 = smov 1   ;;  %v203_v5 = vmul.f32 0.7788008, %v201_v2  ;;  %s732_s21 = smov 127  }
  0x4b   : > { %206 = vrot.lane.b32.xlu0 %v202_v4, %s731_s19  ;;  %237 = vrot.lane.b32.xlu1 %v202_v4, %s732_s21  ;;  %v234_v6 = vmul.f32 0.7788008, %v232_v3  ;;  %v252_v7 = vld [vmem:[%s886_s26 + $0x8] sm:$0xff]  ;;  %v253_v8 = vmul.f32 0.8824969, %v200_v1  ;;  %vm214_vm1 = vcmask 130056  }
  0x4c   : > { %v254_v9 = vmul.f32 0.8824969, %v252_v7  ;;  %v907_v10 = vld [vmem:[%s886_s26 + $0x1] sm:$0xff]  ;;  %v288_v11 = vld [vmem:[%s886_s26 + $0x9] sm:$0x7f]  ;;  %vm216_vm2 = vcmask 129032  }
  0x4d   : > { %v289_v12 = vmul.f32 0.7788008, %v907_v10  ;;  %v290_v13 = vmul.f32 0.7788008, %v288_v11  ;;  %v316_v14 = vld [vmem:[%s886_s26 + $0x9] sm:$0x7f] }
  0x4e   : > { %v318_v15 = vmul.f32 0.7788008, %v316_v14  ;;  %v221_v22 = vld [vmem:[%s886_s26 + $0x8] sm:$0x7f]  ;;  %vm227_vm3 = vcmask 129024   ;;  %vm245_vm4 = vcmask 121856  }
  0x4f   : > { %208 = vrot.lane.b32.xlu0 %v203_v5, %s731_s19  ;;  %239 = vrot.lane.b32.xlu1 %v234_v6, %s732_s21  ;;  %v223_v24 = vmul.f32 0.8824969, %v221_v22  ;;  %vm247_vm5 = vcmask 120832   ;;  %v307_v52 = vmul.f32 0.8824969, %v907_v10  ;;  %s469_s3 = sshll.u32 %s708_s12, 1 }
  0x50   : > { %v198_v16 = vld [vmem:[%s896_s23 + $0x1] sm:$0xff]  ;;  %v199_v19 = vld [vmem:[%s896_s23 + $0x9] sm:$0x7f]  ;;  %v306_v53 = vld [vmem:[%s886_s26 + $0x9] sm:$0x7f]  ;;  %s470_s20 = sshll.u32 %s712_s13, 3 }
  0x51   : > { %v308_v55 = vmul.f32 0.8824969, %v306_v53  ;;  %v333_v1 = vld [vmem:[#allocation5] sm:$0xff]  ;;  %s352_s29 = sadd.s32 %s470_s20, %s469_s3  ;;  %s355_s6 = sshll.u32 %s896_s23, 4  ;;  %v334_v4 = vld [vmem:[#allocation5 + $0x8] sm:$0xff]  ;;  %s975_s6 = int_to_ptr.vmem [resolvable:$true] %s355_s6 }
  0x52   : > { %s471_s30 = sshll.u32 %s352_s29, 7  ;;  %s340_s12 = scalar_lea.sflag [#allocation4], %s882_s22 }
  0x53   : > { %257 = vrot.lane.b32.xlu0 %v253_v8, %s731_s19  ;;  %259 = vrot.lane.b32.xlu1 %v254_v9, %s731_s19  ;;  %s973_s5 = scalar_lea.hbm %s1032_s2, %s471_s30  ;;  %s624_s13 = scalar_lea.vmem %s975_s6, 256 }
  0x54   : > { %p625_p1 = scmp.ne.s32.totalorder %s975_s6, %s624_s13  ;;  %s733_s28 = smov [#allocation7]  }
  0x55   : > { %s628_s8 = sshll.u32 %s733_s28, 4  ;;  %s629_s8 = int_to_ptr.vmem [resolvable:$false] %s628_s8 }
  0x56   : > { %p626_p8 = pnand %p625_p1, %p842_p11  ;;  %s630_s14 = scalar_lea.vmem %s629_s8, 512 }
  0x57   : > { %275 = vrot.lane.b32.xlu0 %v253_v8, %s732_s21  ;;  %277 = vrot.lane.b32.xlu1 %v254_v9, %s732_s21  ;;  %p631_p2 = scmp.lt.s32.totalorder %s975_s6, %s629_s8  ;;  %p632_p0 = scmp.lt.s32.totalorder %s630_s14, %s624_s13 }
  0x58   : > { %p627_p13 = pneg %p626_p8 }
  0x59   : > { %p633_p3 = por %p632_p0, %p631_p2 }
  0x5b   : > { %293 = vrot.lane.b32.xlu0 %v289_v12, %s731_s19  ;;  %295 = vrot.lane.b32.xlu1 %v290_v13, %s731_s19  ;;  %p634_p5 = pnand %p633_p3, %p627_p13 }
  0x5f   : > { %321 = vrot.lane.b32.xlu0 %v289_v12, %s732_s21  ;;  %323 = vrot.lane.b32.xlu1 %v318_v15, %s732_s21 }
  0xbd   : > { %v207_v17 = vpop.permute.xlu0 %206  ;;  %v238_v28 = vpop.permute.xlu1 %237 }
  0xbe   : > { %v212_v18 = vadd.f32 %v207_v17, %v198_v16 }
  0xc0   : > { %215 = vst.msk [vmem:[%s896_s23 + $0x1] sm:$0xff] %vm214_vm1, %v212_v18 }
  0xc1   : > { %v209_v20 = vpop.permute.xlu0 %208  ;;  %v240_v31 = vpop.permute.xlu1 %239 }
  0xc2   : > { %v213_v21 = vadd.f32 %v209_v20, %v199_v19 }
  0xc4   : > { %217 = vst.msk [vmem:[%s896_s23 + $0x9] sm:$0x7f] %vm216_vm2, %v213_v21 }
  0xc5   : > { %v258_v34 = vpop.permute.xlu0 %257  ;;  %v260_v37 = vpop.permute.xlu1 %259 }
  0xc7   : > { %v218_v23 = vld [vmem:[%s896_s23 + $0x1] sm:$0xff] }
  0xc8   : > { %v224_v25 = vadd.f32 %v253_v8, %v218_v23 }
  0xc9   : > { %v276_v40 = vpop.permute.xlu0 %275  ;;  %v278_v43 = vpop.permute.xlu1 %277 }
  0xca   : > { %226 = vst.msk [vmem:[%s896_s23 + $0x1] sm:$0xff] %vm195_vm0, %v224_v25 }
  0xcb   : > { %v219_v26 = vld [vmem:[%s896_s23 + $0x9] sm:$0x7f] }
  0xcc   : > { %v225_v27 = vadd.f32 %v223_v24, %v219_v26 }
  0xcd   : > { %v294_v46 = vpop.permute.xlu0 %293  ;;  %v296_v49 = vpop.permute.xlu1 %295 }
  0xce   : > { %228 = vst.msk [vmem:[%s896_s23 + $0x9] sm:$0x7f] %vm227_vm3, %v225_v27 }
  0xd1   : > { %v229_v29 = vld [vmem:[%s896_s23 + $0x1] sm:$0xff]  ;;  %v322_v59 = vpop.permute.xlu0 %321  ;;  %v324_v62 = vpop.permute.xlu1 %323 }
  0xd2   : > { %v243_v30 = vadd.f32 %v238_v28, %v229_v29 }
  0xd4   : > { %246 = vst.msk [vmem:[%s896_s23 + $0x1] sm:$0xff] %vm245_vm4, %v243_v30 }
  0xd5   : > { %v230_v32 = vld [vmem:[%s896_s23 + $0x9] sm:$0x7f] }
  0xd6   : > { %v244_v33 = vadd.f32 %v240_v31, %v230_v32 }
  0xd8   : > { %248 = vst.msk [vmem:[%s896_s23 + $0x9] sm:$0x7f] %vm247_vm5, %v244_v33 }
  0xdb   : > { %v249_v35 = vld [vmem:[%s896_s23] sm:$0xff] }
  0xdc   : > { %v263_v36 = vadd.f32 %v258_v34, %v249_v35 }
  0xde   : > { %265 = vst.msk [vmem:[%s896_s23] sm:$0xff] %vm214_vm1, %v263_v36 }
  0xdf   : > { %v250_v38 = vld [vmem:[%s896_s23 + $0x8] sm:$0xff] }
  0xe0   : > { %v264_v39 = vadd.f32 %v260_v37, %v250_v38 }
  0xe2   : > { %266 = vst.msk [vmem:[%s896_s23 + $0x8] sm:$0xff] %vm214_vm1, %v264_v39 }
  0xe5   : > { %v267_v41 = vld [vmem:[%s896_s23] sm:$0xff] }
  0xe6   : > { %v281_v42 = vadd.f32 %v276_v40, %v267_v41 }
  0xe8   : > { %283 = vst.msk [vmem:[%s896_s23] sm:$0xff] %vm245_vm4, %v281_v42 }
  0xe9   : > { %v268_v44 = vld [vmem:[%s896_s23 + $0x8] sm:$0xff] }
  0xea   : > { %v282_v45 = vadd.f32 %v278_v43, %v268_v44 }
  0xec   : > { %284 = vst.msk [vmem:[%s896_s23 + $0x8] sm:$0xff] %vm245_vm4, %v282_v45 }
  0xef   : > { %v285_v47 = vld [vmem:[%s896_s23] sm:$0xff] }
  0xf0   : > { %v299_v48 = vadd.f32 %v294_v46, %v285_v47 }
  0xf2   : > { %301 = vst.msk [vmem:[%s896_s23] sm:$0xff] %vm214_vm1, %v299_v48 }
  0xf3   : > { %v286_v50 = vld [vmem:[%s896_s23 + $0x8] sm:$0x7f] }
  0xf4   : > { %v300_v51 = vadd.f32 %v296_v49, %v286_v50 }
  0xf6   : > { %302 = vst.msk [vmem:[%s896_s23 + $0x8] sm:$0x7f] %vm216_vm2, %v300_v51 }
  0xf9   : > { %v303_v54 = vld [vmem:[%s896_s23] sm:$0xff] }
  0xfa   : > { %v309_v56 = vadd.f32 %v307_v52, %v303_v54 }
  0xfc   : > { %311 = vst.msk [vmem:[%s896_s23] sm:$0xff] %vm195_vm0, %v309_v56 }
  0xfd   : > { %v304_v57 = vld [vmem:[%s896_s23 + $0x8] sm:$0x7f] }
  0xfe   : > { %v310_v58 = vadd.f32 %v308_v55, %v304_v57 }
 0x100   : > { %312 = vst.msk [vmem:[%s896_s23 + $0x8] sm:$0x7f] %vm227_vm3, %v310_v58 }
 0x103   : > { %v313_v60 = vld [vmem:[%s896_s23] sm:$0xff] }
 0x104   : > { %v327_v61 = vadd.f32 %v322_v59, %v313_v60 }
 0x106   : > { %329 = vst.msk [vmem:[%s896_s23] sm:$0xff] %vm245_vm4, %v327_v61 }
 0x107   : > { %v314_v63 = vld [vmem:[%s896_s23 + $0x8] sm:$0x7f] }
 0x108   : > { %v328_v0 = vadd.f32 %v324_v62, %v314_v63 }
 0x10a   : > { %330 = vst.msk [vmem:[%s896_s23 + $0x8] sm:$0x7f] %vm247_vm5, %v328_v0 }
 0x10d   : > { %v331_v2 = vld [vmem:[%s896_s23] sm:$0xff] }
 0x10e   : > { %v335_v3 = vmul.f32 %v333_v1, %v331_v2 }
 0x110   : > { %337 = vst.msk [vmem:[%s896_s23] sm:$0xff] %vm195_vm0, %v335_v3 }
 0x111   : > { %v332_v5 = vld [vmem:[%s896_s23 + $0x8] sm:$0xff] }
 0x112   : > { %v336_v6 = vmul.f32 %v334_v4, %v332_v5 }
 0x114   : > { %338 = vst.msk [vmem:[%s896_s23 + $0x8] sm:$0xff] %vm195_vm0, %v336_v6 }
 0x115   : > { %637 = shalt.err (!%p634_p5)
}
 0x116   : > { %s638_s1 = scalar_lea.hbm %s973_s5, 256  ;;  %s642_s26 = scalar_lea.hbm %s1032_s2, 2048 }
 0x117   : > { %p639_p4 = scmp.ne.s32.totalorder %s973_s5, %s638_s1  ;;  %p643_p9 = scmp.lt.s32.totalorder %s973_s5, %s1032_s2 }
 0x118   : > { %p644_p10 = scmp.lt.s32.totalorder %s642_s26, %s638_s1 }
 0x119   : > { %p640_p6 = pnand %p639_p4, %p842_p11 }
 0x11a   : > { %p645_p12 = por %p644_p10, %p643_p9 }
 0x11b   : > { %p641_p7 = pneg %p640_p6 }
 0x11d   : > { %p646_p1 = pnand %p645_p12, %p641_p7 }
 0x11f   : > { %649 = shalt.err (!%p646_p1)
}
 0x120   : > { %s734_s21 = smov 128   ;;  %s735_s3 = smov 8  }
 0x121   : > { %480 = dma.vmem_to_hbm [thread:$0]  (%p842_p11), %s975_s6, 256, %s973_s5, %s340_s12, %s734_s21, %s734_s21, %s735_s3  }
 0x122 PF: > { %s1055_s20 = sld [smem:[#allocation12_spill]]  ;;  %p497_p8 = scmp.ge.s32.totalorder %s724_s16, 2 }
 0x123   : > { %s370_s29 = sand.u32 1, %s696_s9  }
 0x124   : > { %s371_s30 = scalar_lea.sflag [#allocation4], %s370_s29 }
 0x128   : > { %p1056_p13 = scmp.ne.s32.totalorder %s1055_s20, 0 }
 0x12a   : > { %p491_p2 = pnand %p497_p8, %p1056_p13 }
 0x12c   : > { %p492_p0 = pneg %p491_p2 }
 0x12e   : > { %691 = dma.done.wait (%p492_p0), %s371_s30, 256  }
 0x12f   : > { %693 = vsyncadd (%p492_p0), %s371_s30, 4294967040  ;;  %s19_s16 = sadd.s32 1, %s724_s16   ;;  %s1057_s12 = sld [smem:[#allocation11_spill]] }
 0x130   : > { %p16_p3 = scmp.ge.s32.totalorder %s19_s16, 10   ;;  %s1058_s14 = sld [smem:[#allocation13_spill]] }
 0x131   : > { %s1059_s9 = smov %s700_s10  ;;  %s1060_s10 = smov %s704_s11 }
 0x132   : > { %s1061_s11 = smov %s859_s27  ;;  %s1062_s13 = smov %s720_s15 }
 0x133   : > { %s1063_s15 = smov %s1069_s4  ;;  %18 = sbr.rel (!%p16_p3) target bundleno = 10 (0xa), region = 77 }
 0x138   :  { %376 = vsyncpa [#allocation3], 1 }
 0x139   :  { %378 = vsyncpa [#allocation3 + $0x1], 1 }
 0x13a   :  { %379 = vsyncpa [#allocation6], 1 }
 0x13b   :  { %380 = vsyncpa [#allocation4], 1 }
 0x13c   :  { %382 = vsyncpa [#allocation4 + $0x1], 1 }

</bundles_post_ra>
